<compile_context>
chip_gen: v7x
topology: tpu7x:2x2x1
jax: 0.10.0
libtpu: 0.0.40
codegen_flags: <defaults>
</compile_context>

<pallas_src>
import jax
import jax.numpy as jnp
from jax.experimental import pallas as pl
from jax.experimental.pallas import tpu as pltpu


_VMEM_TILE_BUDGET = 24 * 1024 * 1024   # tile-set budget (double-buffered), all chips
_VMEM_LIMIT_BYTES = 32 * 1024 * 1024   # scoped VMEM limit; < v7x's 64 MiB physical


def _round_up(x, m):
    return ((x + m - 1) // m) * m


def _tile_footprint_bytes(tm, tk, tn):
    # f32: double-buffered x/w/bias input tiles + (resident, double-buffered) output tile.
    return 4 * (2 * (tm * tk + tk * tn + tn) + 2 * tm * tn)


def _select_tiles(M_pad, K_pad, N_pad):
    """Pick (tm, tk, tn).  Collapse the grid entirely when everything fits VMEM."""
    if _tile_footprint_bytes(M_pad, K_pad, N_pad) <= _VMEM_TILE_BUDGET:
        # Whole problem in one kernel invocation: no grid-step overhead,
        # no re-streaming of x or w.
        # Note: on v7x this leaves only one TensorCore busy; acceptable for the
        # small/medium shapes this module is used with.
        return M_pad, K_pad, N_pad

    def pick(dim, candidates):
        for c in candidates:
            if c <= dim and dim % c == 0:
                return c
        return dim

    # Prefer 256-multiples for tm/tn (v6e/v7x MXU is 2x256x256); keep full M
    # when it is small so the LHS fills the MXU rows.
    tm = M_pad if M_pad <= 512 else pick(M_pad, (512, 256, 128, 64, 32, 16, 8))
    tn = pick(N_pad, (512, 256, 128))
    tk = pick(K_pad, (2048, 1024, 512, 256, 128))

    # Shrink K first (only adds grid steps), then N, then M, until the
    # double-buffered tile set fits the budget.
    while _tile_footprint_bytes(tm, tk, tn) > _VMEM_TILE_BUDGET and tk > 128:
        tk //= 2
    while _tile_footprint_bytes(tm, tk, tn) > _VMEM_TILE_BUDGET and tn > 128:
        tn //= 2
    while _tile_footprint_bytes(tm, tk, tn) > _VMEM_TILE_BUDGET and tm > 8 and tm % 16 == 0:
        tm //= 2
    return tm, tk, tn


def linear_pow_kernel(x_ref, w_ref, b_ref, e_ref, o_ref):
    k = pl.program_id(2)

    # MXU matmul for this (i, j, k) tile; accumulate directly into the
    # VMEM-resident f32 output tile (same (i, j) block for every k).
    partial = jnp.dot(x_ref[...], w_ref[...], preferred_element_type=jnp.float32)

    @pl.when(k == 0)
    def _init():
        # Seed the accumulator with the broadcast bias (one VPU pass instead
        # of zero-fill now + bias add at finalize).
        o_ref[...] = partial + b_ref[...]

    @pl.when(k > 0)
    def _accum():
        o_ref[...] += partial

    @pl.when(k == pl.num_programs(2) - 1)
    def _finalize():
        e = e_ref[0]              # scalar exponent from SMEM
        y = o_ref[...]

        # e == 1.0 (module init value): identity, nothing to do.

        @pl.when(e == 2.0)
        def _square():            # single VPU op, keeps the EUP off the critical path
            o_ref[...] = y * y

        @pl.when(jnp.logical_and(e != 1.0, e != 2.0))
        def _general_pow():
            # torch.pow-like semantics, incl. negative bases with
            # integer-valued exponents (sign-aware exp(e * log|y|)).
            abs_y = jnp.abs(y)
            mag = jnp.exp(e * jnp.log(abs_y))
            e_int = jnp.round(e)
            is_int = e == e_int
            is_odd = jnp.abs(jnp.mod(e_int, 2.0)) == 1.0
            neg = y < 0.0
            sign = jnp.where(jnp.logical_and(neg, is_odd), -1.0, 1.0)
            res = jnp.where(jnp.logical_and(neg, jnp.logical_not(is_int)),
                            jnp.float32(jnp.nan), sign * mag)
            res = jnp.where(jnp.logical_and(y == 0.0, e == 0.0),
                            jnp.float32(1.0), res)
            o_ref[...] = res.astype(o_ref.dtype)


def prepare_linear_params(w, b):
    """Pad weight/bias ONCE at parameter-init time (not per forward call).

    w: (K, N) f32 (already transposed vs. torch's (N, K)), b: (1, N) f32.
    Returns (w_padded, b_padded, (K, N)).
    """
    K, N = w.shape
    K_pad = _round_up(K, 128)
    N_pad = _round_up(N, 128)
    w_p = jnp.pad(w, ((0, K_pad - K), (0, N_pad - N)))
    b_p = jnp.pad(b, ((0, 0), (0, N_pad - N)))
    return w_p, b_p, (K, N)


def example_module_forward(x, w_p, b_p, exponent, orig_kn):
    """Forward pass: pow(x @ w + b, exponent).

    x: (M, K) f32; w_p: (K_pad, N_pad) pre-padded weights; b_p: (1, N_pad);
    exponent: (1,) f32; orig_kn: (K, N) original (unpadded) dims.
    """
    K, N = orig_kn
    M, Kx = x.shape
    K_pad, N_pad = w_p.shape
    assert Kx == K and K_pad == _round_up(K, 128) and N_pad == _round_up(N, 128)
    assert x.dtype == jnp.float32  # output doubles as the f32 accumulator

    M_pad = _round_up(M, 8)
    x_p = jnp.pad(x, ((0, M_pad - M), (0, K_pad - K)))

    tm, tk, tn = _select_tiles(M_pad, K_pad, N_pad)
    grid = (M_pad // tm, N_pad // tn, K_pad // tk)

    # Advisory cost; account for re-streaming (x read N_pad/tn times, w read
    # M_pad/tm times).
    cost = pl.CostEstimate(
        flops=2 * M_pad * N_pad * K_pad,
        transcendentals=2 * M_pad * N_pad,   # log + exp on the general-exponent path
        bytes_accessed=4 * (M_pad * K_pad * (N_pad // tn)
                            + K_pad * N_pad * (M_pad // tm)
                            + N_pad * (M_pad // tm)
                            + M_pad * N_pad),
    )

    out_p = pl.pallas_call(
        linear_pow_kernel,
        out_shape=jax.ShapeDtypeStruct((M_pad, N_pad), jnp.float32),
        grid=grid,
        in_specs=[
            pl.BlockSpec((tm, tk), lambda i, j, k: (i, k)),        # x tile
            pl.BlockSpec((tk, tn), lambda i, j, k: (k, j)),        # w tile
            pl.BlockSpec((1, tn), lambda i, j, k: (0, j)),         # bias tile
            pl.BlockSpec(memory_space=pltpu.MemorySpace.SMEM),     # exponent scalar
        ],
        out_specs=pl.BlockSpec((tm, tn), lambda i, j, k: (i, j)),  # resident acc
        compiler_params=pltpu.CompilerParams(
            dimension_semantics=("parallel", "parallel", "arbitrary"),
            vmem_limit_bytes=_VMEM_LIMIT_BYTES),
        cost_estimate=cost,
    )(x_p, w_p, b_p, exponent)

    # Padded columns may hold inf/NaN on the general-exponent path (log(0));
    # they are sliced off here and never consumed.
    return out_p[:M, :N]


if __name__ == "__main__":
    key = jax.random.PRNGKey(0)
    kx, kw, kb, kx2, kw2, kb2 = jax.random.split(key, 6)

    # Shapes consistent with the module: Linear(input_dims=32, output_dims=16).
    batch, input_dims, output_dims = 8, 32, 16
    bound = 1.0 / (input_dims ** 0.5)
    w = jax.random.uniform(kw, (input_dims, output_dims), jnp.float32, -bound, bound)
    b = jax.random.uniform(kb, (1, output_dims), jnp.float32, -bound, bound)
    x = jax.random.normal(kx, (batch, input_dims), jnp.float32)

    # Parameters padded once, at "init" time.
    w_p, b_p, kn = prepare_linear_params(w, b)

    # exponent == 1.0 (module init value) -> identity finalize.
    e1 = jnp.array([1.0], dtype=jnp.float32)
    out1 = jax.block_until_ready(example_module_forward(x, w_p, b_p, e1, kn))
    ref1 = jnp.power(x @ w + b, e1[0])
    assert out1.shape == (batch, output_dims)
    assert jnp.allclose(out1, ref1, atol=1e-5, rtol=1e-5)

    # exponent == 2.0 -> y*y fast path; negative pre-activations stay finite.
    e2 = jnp.array([2.0], dtype=jnp.float32)
    out2 = jax.block_until_ready(example_module_forward(x, w_p, b_p, e2, kn))
    ref2 = jnp.power(x @ w + b, e2[0])
    assert jnp.allclose(out2, ref2, atol=1e-4, rtol=1e-4)

    # exponent == 3.0 -> general sign-aware exp(e*log|y|) path.
    e3 = jnp.array([3.0], dtype=jnp.float32)
    out3 = jax.block_until_ready(example_module_forward(x, w_p, b_p, e3, kn))
    ref3 = jnp.power(x @ w + b, e3[0])
    assert jnp.allclose(out3, ref3, atol=1e-4, rtol=1e-4)

    # Non-aligned, larger shape to exercise padding + tile selection.
    M2, K2, N2 = 24, 600, 200
    bound2 = 1.0 / (K2 ** 0.5)
    w2 = jax.random.uniform(kw2, (K2, N2), jnp.float32, -bound2, bound2)
    b2 = jax.random.uniform(kb2, (1, N2), jnp.float32, -bound2, bound2)
    x2 = jax.random.normal(kx2, (M2, K2), jnp.float32)
    w2_p, b2_p, kn2 = prepare_linear_params(w2, b2)
    out4 = jax.block_until_ready(example_module_forward(x2, w2_p, b2_p, e2, kn2))
    ref4 = jnp.power(x2 @ w2 + b2, e2[0])
    assert out4.shape == (M2, N2)
    assert jnp.allclose(out4, ref4, atol=1e-3, rtol=1e-3)

    print("KERNEL_OK")
</pallas_src>

<mosaic_0001>
module attributes {stable_mosaic.version = 11 : i64} {
  func.func @linear_pow_kernel(%arg0: i32, %arg1: i32, %arg2: i32, %arg3: memref<8x128xf32, #tpu.memory_space<vmem>>, %arg4: memref<128x128xf32, #tpu.memory_space<vmem>>, %arg5: memref<1x128xf32, #tpu.memory_space<vmem>>, %arg6: memref<1xf32, #tpu.memory_space<smem>>, %arg7: memref<8x128xf32, #tpu.memory_space<vmem>>) attributes {dimension_semantics = [#tpu.dimension_semantics<parallel>, #tpu.dimension_semantics<parallel>, #tpu.dimension_semantics<arbitrary>], iteration_bounds = array<i64: 1, 1, 1>, scalar_prefetch = 0 : i64, scratch_operands = 0 : i64, tpu.core_type = #tpu.core_type<tc>, window_params = [{transform_indices = @transform_0, window_bounds = array<i64: 8, 128>}, {transform_indices = @transform_1, window_bounds = array<i64: 128, 128>}, {transform_indices = @transform_2, window_bounds = array<i64: 1, 128>}, {transform_indices = @transform_3, window_bounds = array<i64: 1>}, {transform_indices = @transform_4, window_bounds = array<i64: 8, 128>}]} {
    %c0 = arith.constant 0 : index
    %c0_0 = arith.constant 0 : index
    %0 = vector.load %arg3[%c0, %c0_0] : memref<8x128xf32, #tpu.memory_space<vmem>>, vector<8x128xf32>
    %c0_1 = arith.constant 0 : index
    %c0_2 = arith.constant 0 : index
    %1 = vector.load %arg4[%c0_1, %c0_2] : memref<128x128xf32, #tpu.memory_space<vmem>>, vector<128x128xf32>
    %cst = arith.constant dense<0.000000e+00> : vector<8x128xf32>
    %2 = tpu.matmul %0, %1, %cst {dimension_numbers = #tpu.dot_dimension_numbers<[1], [0], [0], [1], [0, 0, 1, 1], [], []>} : vector<8x128xf32>, vector<128x128xf32>, vector<8x128xf32> -> vector<8x128xf32>
    %c0_i32 = arith.constant 0 : i32
    %3 = arith.cmpi eq, %arg2, %c0_i32 : i32
    %4 = arith.extui %3 : i1 to i32
    %c0_i32_3 = arith.constant 0 : i32
    %5 = arith.cmpi ne, %4, %c0_i32_3 : i32
    scf.if %5 {
      %c0_8 = arith.constant 0 : index
      %c0_9 = arith.constant 0 : index
      %12 = vector.load %arg5[%c0_8, %c0_9] : memref<1x128xf32, #tpu.memory_space<vmem>>, vector<1x128xf32>
      %13 = vector.broadcast %12 : vector<1x128xf32> to vector<8x128xf32>
      %14 = arith.addf %2, %13 : vector<8x128xf32>
      %c0_10 = arith.constant 0 : index
      %c0_11 = arith.constant 0 : index
      %15 = vector.load %arg7[%c0_10, %c0_11] : memref<8x128xf32, #tpu.memory_space<vmem>>, vector<8x128xf32>
      tpu.vector_store %arg7[%c0_10, %c0_11], %14 {strides = array<i32>} : memref<8x128xf32, #tpu.memory_space<vmem>>, vector<8x128xf32>,
    } else {
    }
    %c0_i32_4 = arith.constant 0 : i32
    %6 = arith.cmpi sgt, %arg2, %c0_i32_4 : i32
    %7 = arith.extui %6 : i1 to i32
    %c0_i32_5 = arith.constant 0 : i32
    %8 = arith.cmpi ne, %7, %c0_i32_5 : i32
    scf.if %8 {
      %c0_8 = arith.constant 0 : index
      %c0_9 = arith.constant 0 : index
      %12 = vector.load %arg7[%c0_8, %c0_9] : memref<8x128xf32, #tpu.memory_space<vmem>>, vector<8x128xf32>
      %13 = arith.addf %12, %2 : vector<8x128xf32>
      %c0_10 = arith.constant 0 : index
      %c0_11 = arith.constant 0 : index
      %14 = vector.load %arg7[%c0_10, %c0_11] : memref<8x128xf32, #tpu.memory_space<vmem>>, vector<8x128xf32>
      tpu.vector_store %arg7[%c0_10, %c0_11], %13 {strides = array<i32>} : memref<8x128xf32, #tpu.memory_space<vmem>>, vector<8x128xf32>,
    } else {
    }
    %c0_i32_6 = arith.constant 0 : i32
    %9 = arith.cmpi eq, %arg2, %c0_i32_6 : i32
    %10 = arith.extui %9 : i1 to i32
    %c0_i32_7 = arith.constant 0 : i32
    %11 = arith.cmpi ne, %10, %c0_i32_7 : i32
    scf.if %11 {
      %c0_8 = arith.constant 0 : index
      %12 = memref.load %arg6[%c0_8] : memref<1xf32, #tpu.memory_space<smem>>
      %c0_9 = arith.constant 0 : index
      %c0_10 = arith.constant 0 : index
      %13 = vector.load %arg7[%c0_9, %c0_10] : memref<8x128xf32, #tpu.memory_space<vmem>>, vector<8x128xf32>
      %cst_11 = arith.constant 2.000000e+00 : f32
      %14 = arith.cmpf oeq, %12, %cst_11 : f32
      %15 = arith.extui %14 : i1 to i32
      %c0_i32_12 = arith.constant 0 : i32
      %16 = arith.cmpi ne, %15, %c0_i32_12 : i32
      scf.if %16 {
        %22 = arith.mulf %13, %13 : vector<8x128xf32>
        %c0_16 = arith.constant 0 : index
        %c0_17 = arith.constant 0 : index
        %23 = vector.load %arg7[%c0_16, %c0_17] : memref<8x128xf32, #tpu.memory_space<vmem>>, vector<8x128xf32>
        tpu.vector_store %arg7[%c0_16, %c0_17], %22 {strides = array<i32>} : memref<8x128xf32, #tpu.memory_space<vmem>>, vector<8x128xf32>,
      } else {
      }
      %cst_13 = arith.constant 1.000000e+00 : f32
      %17 = arith.cmpf one, %12, %cst_13 : f32
      %cst_14 = arith.constant 2.000000e+00 : f32
      %18 = arith.cmpf one, %12, %cst_14 : f32
      %19 = arith.andi %17, %18 : i1
      %20 = arith.extui %19 : i1 to i32
      %c0_i32_15 = arith.constant 0 : i32
      %21 = arith.cmpi ne, %20, %c0_i32_15 : i32
      scf.if %21 {
        %22 = math.absf %13 : vector<8x128xf32>
        %23 = math.log %22 : vector<8x128xf32>
        %24 = vector.broadcast %12 : f32 to vector<8x128xf32>
        %25 = arith.mulf %24, %23 : vector<8x128xf32>
        %26 = math.exp %25 : vector<8x128xf32>
        %27 = math.roundeven %12 : f32
        %28 = arith.cmpf oeq, %12, %27 : f32
        %cst_16 = arith.constant 2.000000e+00 : f32
        %29 = arith.remf %27, %cst_16 : f32
        %cst_17 = arith.constant 0.000000e+00 : f32
        %30 = arith.cmpf one, %29, %cst_17 : f32
        %cst_18 = arith.constant 0.000000e+00 : f32
        %31 = arith.cmpf olt, %29, %cst_18 : f32
        %cst_19 = arith.constant 0.000000e+00 : f32
        %32 = arith.cmpf olt, %cst_16, %cst_19 : f32
        %33 = arith.xori %31, %32 : i1
        %34 = arith.andi %33, %30 : i1
        %35 = arith.addf %29, %cst_16 : f32
        %36 = arith.select %34, %35, %29 : f32
        %37 = math.absf %36 : f32
        %cst_20 = arith.constant 1.000000e+00 : f32
        %38 = arith.cmpf oeq, %37, %cst_20 : f32
        %cst_21 = arith.constant 0.000000e+00 : f32
        %39 = vector.broadcast %cst_21 : f32 to vector<8x128xf32>
        %40 = arith.cmpf olt, %13, %39 : vector<8x128xf32>
        %41 = vector.broadcast %38 : i1 to vector<8x128xi1>
        %42 = arith.andi %40, %41 : vector<8x128xi1>
        %cst_22 = arith.constant -1.000000e+00 : f32
        %cst_23 = arith.constant 1.000000e+00 : f32
        %43 = vector.broadcast %cst_22 : f32 to vector<8x128xf32>
        %44 = vector.broadcast %cst_23 : f32 to vector<8x128xf32>
        %45 = arith.select %42, %43, %44 : vector<8x128xi1>, vector<8x128xf32>
        %true = arith.constant true
        %46 = arith.xori %28, %true : i1
        %47 = vector.broadcast %46 : i1 to vector<8x128xi1>
        %48 = arith.andi %40, %47 : vector<8x128xi1>
        %49 = arith.mulf %45, %26 : vector<8x128xf32>
        %cst_24 = arith.constant 0x7FC00000 : f32
        %50 = vector.broadcast %cst_24 : f32 to vector<8x128xf32>
        %51 = arith.select %48, %50, %49 : vector<8x128xi1>, vector<8x128xf32>
        %cst_25 = arith.constant 0.000000e+00 : f32
        %52 = vector.broadcast %cst_25 : f32 to vector<8x128xf32>
        %53 = arith.cmpf oeq, %13, %52 : vector<8x128xf32>
        %cst_26 = arith.constant 0.000000e+00 : f32
        %54 = arith.cmpf oeq, %12, %cst_26 : f32
        %55 = vector.broadcast %54 : i1 to vector<8x128xi1>
        %56 = arith.andi %53, %55 : vector<8x128xi1>
        %cst_27 = arith.constant 1.000000e+00 : f32
        %57 = vector.broadcast %cst_27 : f32 to vector<8x128xf32>
        %58 = arith.select %56, %57, %51 : vector<8x128xi1>, vector<8x128xf32>
        %c0_28 = arith.constant 0 : index
        %c0_29 = arith.constant 0 : index
        %59 = vector.load %arg7[%c0_28, %c0_29] : memref<8x128xf32, #tpu.memory_space<vmem>>, vector<8x128xf32>
        tpu.vector_store %arg7[%c0_28, %c0_29], %58 {strides = array<i32>} : memref<8x128xf32, #tpu.memory_space<vmem>>, vector<8x128xf32>,
      } else {
      }
    } else {
    }
    return
  }
  func.func @transform_0(%arg0: i32, %arg1: i32, %arg2: i32) -> (i32, i32) {
    %c0_i32 = arith.constant 0 : i32
    return %arg0, %arg2 : i32, i32
  }
  func.func @transform_1(%arg0: i32, %arg1: i32, %arg2: i32) -> (i32, i32) {
    %c0_i32 = arith.constant 0 : i32
    return %arg2, %arg1 : i32, i32
  }
  func.func @transform_2(%arg0: i32, %arg1: i32, %arg2: i32) -> (i32, i32) {
    %c0_i32 = arith.constant 0 : i32
    %c0_i32_0 = arith.constant 0 : i32
    return %c0_i32, %arg1 : i32, i32
  }
  func.func @transform_3(%arg0: i32, %arg1: i32, %arg2: i32) -> i32 {
    %c0_i32 = arith.constant 0 : i32
    %c0_i32_0 = arith.constant 0 : i32
    return %c0_i32 : i32
  }
  func.func @transform_4(%arg0: i32, %arg1: i32, %arg2: i32) -> (i32, i32) {
    %c0_i32 = arith.constant 0 : i32
    return %arg0, %arg1 : i32, i32
  }
}

</mosaic_0001>

<bundles_post_ra>
// kernel: tpu_custom_call.1
= control target key start
LH: loop header
LB: loop body
LE: loop exit
PB: predicated region body
PF: predicated region fallthrough
CT: control target
= control target key end

     0   :  { %10 = vsyncpa [#allocation4], 0  ;;  %s527_s0 = inlined_call_operand.hbm [shape: f32[8,128], index: 0, kind: input, shape index: {}]   ;;  %s528_s1 = inlined_call_operand.hbm [shape: f32[128,128], index: 1, kind: input, shape index: {}]   ;;  %s529_s2 = inlined_call_operand.vmem [shape: f32[1,128], index: 2, kind: input, shape index: {}]   ;;  %s530_s3 = inlined_call_operand.<no memory space> [shape: f32[1], index: 3, kind: input, shape index: {}]   ;;  %s531_s4 = inlined_call_operand.hbm [shape: f32[8,128], index: 4, kind: output, shape index: {}]  }
   0x1   :  { %11 = vsyncpa [#allocation7], 0 }
   0x2   :  { %12 = vsyncpa [#allocation5], 0  ;;  %s409_s15 = smov [#allocation3]   ;;  %s410_s17 = smov [#allocation6]  }
   0x3   :  { %s19_s16 = sshll.u32 %s409_s15, 4  ;;  %s28_s18 = sshll.u32 %s410_s17, 4  ;;  %s20_s16 = int_to_ptr.vmem [resolvable:$true] %s19_s16  ;;  %s443_s18 = int_to_ptr.vmem [resolvable:$true] %s28_s18 }
   0x4   :  { %s337_s21 = scalar_lea.hbm %s527_s0, 128 }
   0x5   :  { %p338_p0 = scmp.ne.s32.totalorder %s527_s0, %s337_s21  ;;  %p341_p1 = scmp.lt.u32.totalorder %s337_s21, %s527_s0 }
   0x7   :  { %p343_p2 = pnand %p341_p1, %p338_p0 }
   0x9   :  { %346 = shalt.err (!%p343_p2)
}
   0xa   :  { %s347_s26 = scalar_lea.vmem %s20_s16, 128  ;;  %p352_p4 = scmp.lt.s32.totalorder %s20_s16, %s20_s16 }
   0xb   :  { %p348_p3 = scmp.ne.s32.totalorder %s20_s16, %s347_s26  ;;  %p353_p5 = scmp.lt.s32.totalorder %s347_s26, %s347_s26 }
   0xd   :  { %p354_p6 = por %p353_p5, %p352_p4 }
   0xf   :  { %p355_p7 = pnand %p354_p6, %p348_p3 }
  0x11   :  { %358 = shalt.err (!%p355_p7)
}
  0x12   :  { %22 = dma.hbm_to_vmem [thread:$0]  %s527_s0, 128, %s20_s16, [#allocation4]  }
  0x13   :  { %s359_s5 = scalar_lea.hbm %s528_s1, 2048 }
  0x14   :  { %p360_p8 = scmp.ne.s32.totalorder %s528_s1, %s359_s5  ;;  %p363_p9 = scmp.lt.u32.totalorder %s359_s5, %s528_s1 }
  0x16   :  { %p365_p10 = pnand %p363_p9, %p360_p8 }
  0x18   :  { %368 = shalt.err (!%p365_p10)
}
  0x19   :  { %s369_s10 = scalar_lea.vmem %s443_s18, 2048  ;;  %p374_p12 = scmp.lt.s32.totalorder %s443_s18, %s443_s18 }
  0x1a   :  { %p370_p11 = scmp.ne.s32.totalorder %s443_s18, %s369_s10  ;;  %p375_p13 = scmp.lt.s32.totalorder %s369_s10, %s369_s10 }
  0x1c   :  { %p376_p0 = por %p375_p13, %p374_p12 }
  0x1e   :  { %p377_p1 = pnand %p376_p0, %p370_p11 }
  0x20   :  { %380 = shalt.err (!%p377_p1)
}
  0x21   :  { %s411_s0 = smov 128   ;;  %s412_s11 = smov 8  }
  0x22   :  { %34 = dma.hbm_to_vmem [thread:$0]  %s528_s1, 2048, %s443_s18, [#allocation7], %s411_s0, %s411_s0, %s412_s11  }
  0x23   :  { %403 = dma.done.wait [#allocation4], 128  }
  0x24   :  { %404 = vsyncadd [#allocation4], 4294967168 }
  0x25   :  { %405 = dma.done.wait [#allocation7], 2048  }
  0x26   :  { %406 = vsyncadd [#allocation7], 4294965248  ;;  %v413_v0 = vmov 0.0|0.0   ;;  %vm414_vm0 = vmmov 0   ;;  %v415_v1 = vmov 0.0   ;;  %v46_v2 = vld [vmem:[#allocation6] sm:$0xff] }
  0x27   :  { %298 = vmatprep.subr.bf16.mxu0 %v413_v0  ;;  %295 = vmatprep.mubr.msk.f32.mxu0 %vm414_vm0, %v415_v1  ;;  %v47_v3 = vld [vmem:[#allocation6 + $0x8] sm:$0xff]  ;;  %v48_v4 = vld [vmem:[#allocation6 + $0x10] sm:$0xff]  ;;  %v49_v6 = vld [vmem:[#allocation6 + $0x18] sm:$0xff]  ;;  %p157_p2 = scmp.eq.f32.partialorder %s530_s3, 2.0 }
  0x28   :  { %v299_v5 = vpack.c.bf16 %v47_v3, %v46_v2  ;;  %v302_v7 = vpack.c.bf16 %v49_v6, %v48_v4  ;;  %v50_v8 = vld [vmem:[#allocation6 + $0x20] sm:$0xff]  ;;  %v51_v9 = vld [vmem:[#allocation6 + $0x28] sm:$0xff]  ;;  %v52_v11 = vld [vmem:[#allocation6 + $0x30] sm:$0xff] }
  0x29   :  { %v305_v10 = vpack.c.bf16 %v51_v9, %v50_v8  ;;  %v53_v12 = vld [vmem:[#allocation6 + $0x38] sm:$0xff]  ;;  %v54_v14 = vld [vmem:[#allocation6 + $0x40] sm:$0xff]  ;;  %v55_v15 = vld [vmem:[#allocation6 + $0x48] sm:$0xff] }
  0x2a   :  { %300 = vmatpush3.bf16.msra.mxu0 %v299_v5  ;;  %v308_v13 = vpack.c.bf16 %v53_v12, %v52_v11  ;;  %v311_v16 = vpack.c.bf16 %v55_v15, %v54_v14  ;;  %v56_v17 = vld [vmem:[#allocation6 + $0x50] sm:$0xff]  ;;  %v57_v18 = vld [vmem:[#allocation6 + $0x58] sm:$0xff]  ;;  %v58_v20 = vld [vmem:[#allocation6 + $0x60] sm:$0xff] }
  0x2b   :  { %301 = vmatprep.subr.bf16.mxu0 %v413_v0  ;;  %v314_v19 = vpack.c.bf16 %v57_v18, %v56_v17  ;;  %v59_v21 = vld [vmem:[#allocation6 + $0x68] sm:$0xff]  ;;  %v60_v23 = vld [vmem:[#allocation6 + $0x70] sm:$0xff]  ;;  %v61_v24 = vld [vmem:[#allocation6 + $0x78] sm:$0xff] }
  0x2c   :  { %v317_v22 = vpack.c.bf16 %v59_v21, %v58_v20  ;;  %v320_v25 = vpack.c.bf16 %v61_v24, %v60_v23  ;;  %v45_v26 = vld [vmem:[#allocation3] sm:$0xff] }
  0x2d   :  { %v243_v27 = vld [vmem:[%s529_s2] ss:$0 sm:$0xff] }
  0x2e   :  { %303 = vmatpush3.bf16.msra.mxu0 %v302_v7 }
  0x2f   :  { %304 = vmatprep.subr.bf16.mxu0 %v413_v0 }
  0x32   :  { %306 = vmatpush3.bf16.msra.mxu0 %v305_v10 }
  0x33   :  { %307 = vmatprep.subr.bf16.mxu0 %v413_v0 }
  0x36   :  { %309 = vmatpush3.bf16.msra.mxu0 %v308_v13 }
  0x37   :  { %310 = vmatprep.subr.bf16.mxu0 %v413_v0 }
  0x3a   :  { %312 = vmatpush3.bf16.msra.mxu0 %v311_v16 }
  0x3b   :  { %313 = vmatprep.subr.bf16.mxu0 %v413_v0 }
  0x3e   :  { %315 = vmatpush3.bf16.msra.mxu0 %v314_v19 }
  0x3f   :  { %316 = vmatprep.subr.bf16.mxu0 %v413_v0 }
  0x42   :  { %318 = vmatpush3.bf16.msra.mxu0 %v317_v22 }
  0x43   :  { %319 = vmatprep.subr.bf16.mxu0 %v413_v0 }
  0x46   :  { %321 = vmatpush3.bf16.msra.mxu0 %v320_v25 }
  0x49   :  { %296 = vmatmul.mubr.f32.vlgmr.msra.gmra.mrb[0].mxu0 %v45_v26 }
 0x119   :  { %160 = sbr.rel (!%p157_p2) target bundleno = 290 (0x122), region = 41 }
 0x11c   :  { %v128_v28 = vpop.f32.mrb[0].mxu0 }
 0x11d   :  { %v480_v29 = vadd.f32 %v243_v27, %v128_v28  ;;  %v297_v30 = vpop.f32.mrb[1].mxu0 }
 0x11f   :  { %144 = vst [vmem:[#allocation8] sm:$0xff] %v480_v29  ;;  %v161_v31 = vmul.f32 (%p157_p2), %v480_v29, %v480_v29 }
 0x121   :  { %162 = vst [vmem:[#allocation8] sm:$0xff] %v161_v31 }
 0x122 PF:  { %p163_p3 = scmp.ne.f32.partialorder %s530_s3, 1.0  ;;  %p164_p4 = scmp.ne.f32.partialorder %s530_s3, 2.0 }
 0x124   :  { %p165_p5 = pnand %p164_p4, %p163_p3 }
 0x125   :  { %s176_s22 = scvt.f32.s32 (!%p165_p5), %s530_s3  ;;  %s179_s25 = sand.u32 (!%p165_p5), 2147483648, %s530_s3  ;;  %v169_v42 = vand.u32 (!%p165_p5), 2147483647, %v480_v29  ;;  %v172_v45 = vstv (!%p165_p5), %s530_s3  ;;  %vm206_vm2 = vcmp.lt.f32.partialorder (!%p165_p5), %v480_v29, 0.0  ;;  %vm219_vm5 = vcmp.eq.f32.partialorder (!%p165_p5), %v480_v29, 0.0 }
 0x126   :  { %168 = sbr.rel (%p165_p5) target bundleno = 388 (0x184), region = 45  ;;  %s181_s28 = sand.u32 (!%p165_p5), 2147483647, %s530_s3  ;;  %v416_v52 = vmov (!%p165_p5), 1.0  }
 0x127   :  { %s177_s29 = scvt.s32.f32 (!%p165_p5), %s176_s22  ;;  %p182_p6 = scmp.lt.f32.partialorder (!%p165_p5), %s181_s28, 2.1474836e+09  ;;  %333 = vlog2.f32 (!%p165_p5), %v169_v42 }
 0x128   :  { %p220_p10 = scmp.eq.f32.partialorder (!%p165_p5), %s530_s3, 0.0 }
 0x129   :  { %s178_s30 = sand.u32 (!%p165_p5), 2147483647, %s177_s29 }
 0x12a   :  { %s180_s5 = sor.u32 (!%p165_p5), %s179_s25, %s178_s30 }
 0x12d   :  { %s533_s5 = smov (!%p182_p6, %s180_s5), %s530_s3 }
 0x12e   :  { %v185_v32 = vstv %s533_s5  ;;  %p184_p7 = scmp.eq.f32.partialorder %s530_s3, %s533_s5 }
 0x12f   :  { %v186_v33 = vand.u32 2147483647, %v185_v32  ;;  %v195_v38 = vand.u32 2147483648, %v185_v32  ;;  %s221_s15 = scalar_select %p220_p10, 1, 0 }
 0x130   :  { %s245_s14 = scalar_select %p184_p7, 0, 1 }
 0x131   :  { %v188_v34 = vmul.f32 0.5, %v186_v33  ;;  %v334_v43 = vpop.eup %333  ;;  %v222_v49 = vstv %s221_s15 }
 0x132   :  { %v171_v44 = vmul.f32 0.6931472, %v334_v43  ;;  %v214_v48 = vstv %s245_s14  ;;  %vm223_vm6 = vcmp.eq.s32.totalorder %v222_v49, 1 }
 0x133   :  { %v189_v35 = vfloor.f32 %v188_v34  ;;  %vm215_vm3 = vcmp.eq.s32.totalorder %v214_v48, 1  ;;  %vm224_vm9 = vmand %vm219_vm5, %vm223_vm6 }
 0x134   :  { %v173_v46 = vmul.f32 %v172_v45, %v171_v44  ;;  %vm216_vm8 = vmand %vm206_vm2, %vm215_vm3 }
 0x135   :  { %v190_v36 = vmul.f32 2.0, %v189_v35 }
 0x136   :  { %v174_v47 = vmul.f32 1.442695, %v173_v46 }
 0x137   :  { %v191_v37 = vsub.f32 %v186_v33, %v190_v36 }
 0x138   :  { %335 = vpow2.f32 %v174_v47 }
 0x139   :  { %vm192_vm1 = vcmp.eq.f32.partialorder %v191_v37, 2.0 }
 0x13a   :  { %v193_v39 = vsel %vm192_vm1, 0.0, %v191_v37 }
 0x13b   :  { %v194_v40 = vand.u32 2147483647, %v193_v39 }
 0x13d   :  { %v196_v41 = vor.u32 %v195_v38, %v194_v40 }
 0x13f   :  { %322 = vpush %v196_v41 }
 0x142   :  { %v336_v51 = vpop.eup %335 }
 0x170   :  { %s323_s11 = spop %322 }
 0x171   :  { %p198_p8 = scmp.ne.f32.partialorder %s323_s11, 0.0  ;;  %p199_p9 = scmp.lt.f32.partialorder %s323_s11, 0.0 }
 0x172   :  { %s202_s1 = sadd.f32 2.0, %s323_s11 }
 0x173   :  { %p200_p11 = pnand %p199_p9, %p198_p8 }
 0x175   :  { %s535_s11 = smov (!%p200_p11, %s323_s11), %s202_s1 }
 0x176   :  { %s204_s16 = sand.u32 2147483647, %s535_s11 }
 0x177   :  { %p205_p12 = scmp.eq.f32.partialorder %s204_s16, 1.0 }
 0x179   :  { %s207_s17 = scalar_select %p205_p12, 1, 0 }
 0x17b   :  { %v208_v50 = vstv %s207_s17 }
 0x17c   :  { %vm209_vm4 = vcmp.eq.s32.totalorder %v208_v50, 1 }
 0x17d   :  { %vm210_vm7 = vmand %vm206_vm2, %vm209_vm4 }
 0x17e   :  { %v211_v53 = vsel %vm210_vm7, -1.0, %v416_v52 }
 0x17f   :  { %v217_v54 = vmul.f32 %v336_v51, %v211_v53 }
 0x181   :  { %v218_v55 = vsel %vm216_vm8, nan, %v217_v54 }
 0x182   :  { %v225_v56 = vsel %vm224_vm9, 1.0, %v218_v55 }
 0x183   :  { %226 = vst [vmem:[#allocation8] sm:$0xff] %v225_v56 }
 0x184 PF:  { %s417_s3 = smov [#allocation8]  }
 0x185   :  { %s233_s18 = sshll.u32 %s417_s3, 4  ;;  %s234_s18 = int_to_ptr.vmem [resolvable:$true] %s233_s18 }
 0x186   :  { %s381_s19 = scalar_lea.vmem %s234_s18, 128  ;;  %p386_p0 = scmp.lt.s32.totalorder %s234_s18, %s234_s18 }
 0x187   :  { %p382_p13 = scmp.ne.s32.totalorder %s234_s18, %s381_s19  ;;  %p387_p1 = scmp.lt.s32.totalorder %s381_s19, %s381_s19 }
 0x189   :  { %p388_p2 = por %p387_p1, %p386_p0 }
 0x18b   :  { %p389_p3 = pnand %p388_p2, %p382_p13 }
 0x18d   :  { %392 = shalt.err (!%p389_p3)
}
 0x18e   :  { %s393_s21 = scalar_lea.hbm %s531_s4, 128 }
 0x18f   :  { %p394_p4 = scmp.ne.s32.totalorder %s531_s4, %s393_s21  ;;  %p397_p5 = scmp.lt.u32.totalorder %s393_s21, %s531_s4 }
 0x191   :  { %p399_p6 = pnand %p397_p5, %p394_p4 }
 0x193   :  { %402 = shalt.err (!%p399_p6)
}
 0x194   :  { %236 = dma.vmem_to_hbm [thread:$0]  %s234_s18, 128, %s531_s4, [#allocation5]  }
 0x195   :  { %407 = dma.done.wait [#allocation5], 128  }
 0x196   :  { %408 = vsyncadd [#allocation5], 4294967168 }
 0x197   :  { %240 = vsyncpa [#allocation4], 1 }
 0x198   :  { %241 = vsyncpa [#allocation7], 1 }
 0x199   :  { %242 = vsyncpa [#allocation5], 1 }

</bundles_post_ra>
